<compile_context>
chip_gen: v7x
topology: tpu7x:2x2x1
jax: 0.10.0
libtpu: 0.0.40
codegen_flags: <defaults>
</compile_context>

<pallas_src>
import functools

import jax
import jax.numpy as jnp
from jax.experimental import pallas as pl
from jax.experimental.pallas import tpu as pltpu


def _chip_budget():
    """Generation-aware tile / VMEM budgets (v5e & v6e: 128 MiB VMEM, v7x: 64 MiB)."""
    vmem_phys = None
    try:
        vmem_phys = pltpu.get_tpu_info().vmem_capacity_bytes
    except Exception:
        vmem_phys = None
    if vmem_phys is not None and vmem_phys >= 100 * 1024 * 1024:
        # v5e / v6e: plenty of physical VMEM -> bigger tiles, fewer grid steps.
        return {"vmem_limit": 64 << 20, "tile_target": 6 << 20, "fused_limit": 8 << 20}
    # v7x (64 MiB physical) or unknown chip -> conservative sizing.
    return {"vmem_limit": 32 << 20, "tile_target": 3 << 20, "fused_limit": 4 << 20}


def _pick_hw_tile(hw, c, itemsize, target_bytes):
    """HW tile (multiple of 128, or the full HW) with a (1, C, t_hw) block <= target.

    No divisibility requirement: the grid uses pl.cdiv and the tail is masked/clipped.
    """
    if hw <= 128:
        return hw
    per_col = max(1, c * itemsize)
    t = max(128, (target_bytes // per_col) // 128 * 128)
    return hw if t >= hw else t


# ----------------------------- kernels --------------------------------------


def _fused_kernel(x_ref, w1t_ref, b1_ref, w2_ref, b2_ref, o_ref, *, inv_hw):
    """Whole-sample SE: pool -> FC(ReLU) -> FC(Sigmoid) -> rescale; x read once."""
    x = x_ref[0]                                                          # (C, HW) native
    pooled = jnp.sum(x.astype(jnp.float32), axis=-1, keepdims=True) * inv_hw   # (C, 1) f32
    # FC1: h[j] = relu(sum_c pooled[c] * w1[j, c] + b1[j]);  w1t is (C, Cs).
    h = jnp.maximum(
        jnp.sum(pooled * w1t_ref[...], axis=0, keepdims=True) + b1_ref[...], 0.0)   # (1, Cs)
    # FC2: s[c] = sigmoid(sum_j h[j] * w2[c, j] + b2[c]);  w2 is (C, Cs).
    s = jax.nn.sigmoid(
        jnp.sum(h * w2_ref[...], axis=-1, keepdims=True) + b2_ref[...])             # (C, 1)
    o_ref[0] = (x * s.astype(x.dtype)).astype(o_ref.dtype)


def _pool_kernel(x_ref, sum_ref, *, hw, t_hw, tpg, needs_mask):
    """Accumulate a (possibly tail-masked) spatial sum of one (1, C, t_hw) tile."""
    g = pl.program_id(1)
    t = pl.program_id(2)

    @pl.when(t == 0)
    def _():
        sum_ref[...] = jnp.zeros_like(sum_ref)

    x = x_ref[...].astype(jnp.float32)                                    # (1, C, t_hw)
    if needs_mask:
        tile = g * tpg + t
        lane = jax.lax.broadcasted_iota(jnp.int32, x.shape, 2)
        x = jnp.where(lane < (hw - tile * t_hw), x, 0.0)
    sum_ref[...] += jnp.sum(x, axis=-1, keepdims=True)[None]              # (1, 1, C, 1)


def _rescale_kernel(x_ref, s_ref, o_ref):
    """o = x * scale (native dtype), scale broadcast over the spatial (lane) axis."""
    o_ref[...] = (x_ref[...] * s_ref[...]).astype(o_ref.dtype)


# ----------------------------- wrapper --------------------------------------


def squeeze_excitation(x_nchw, w1, b1, w2, b2, *, fused=None, tile_hw=None, donate_x=False):
    """x_nchw: (N, C, H, W); w1: (Cs, C, 1, 1); b1: (Cs,); w2: (C, Cs, 1, 1); b2: (C,)."""
    N, C, H, W = x_nchw.shape
    HW = H * W
    Cs = w1.shape[0]
    dtype = x_nchw.dtype
    itemsize = jnp.dtype(dtype).itemsize
    budget = _chip_budget()

    x = x_nchw.reshape(N, C, HW)
    w1m = w1.reshape(Cs, C).astype(jnp.float32)     # (Cs, C)
    w2m = w2.reshape(C, Cs).astype(jnp.float32)     # (C, Cs)
    b1f = b1.astype(jnp.float32)
    b2f = b2.astype(jnp.float32)

    alias_kwargs = {"input_output_aliases": {0: 0}} if donate_x else {}

    if fused is None:
        fused = C * HW * itemsize <= budget["fused_limit"]

    if fused:
        # ---- single-pass fused kernel: x read from HBM exactly once --------
        out = pl.pallas_call(
            functools.partial(_fused_kernel, inv_hw=1.0 / float(HW)),
            out_shape=jax.ShapeDtypeStruct((N, C, HW), dtype),
            grid_spec=pltpu.PrefetchScalarGridSpec(
                num_scalar_prefetch=0,
                grid=(N,),
                in_specs=[
                    pl.BlockSpec((1, C, HW), lambda n: (n, 0, 0)),
                    pl.BlockSpec((C, Cs), lambda n: (0, 0)),
                    pl.BlockSpec((1, Cs), lambda n: (0, 0)),
                    pl.BlockSpec((C, Cs), lambda n: (0, 0)),
                    pl.BlockSpec((C, 1), lambda n: (0, 0)),
                ],
                out_specs=pl.BlockSpec((1, C, HW), lambda n: (n, 0, 0)),
            ),
            compiler_params=pltpu.CompilerParams(
                dimension_semantics=("parallel",),
                vmem_limit_bytes=budget["vmem_limit"],
            ),
            cost_estimate=pl.CostEstimate(
                flops=3 * N * C * HW + 4 * N * C * Cs,
                transcendentals=N * C,
                bytes_accessed=2 * N * C * HW * itemsize,
            ),
            **alias_kwargs,
        )(x, w1m.T, b1f.reshape(1, Cs), w2m, b2f.reshape(C, 1))
        return out.reshape(N, C, H, W)

    # ---------------- two-pass path (large per-sample slabs) ----------------
    t_hw = min(tile_hw, HW) if tile_hw else _pick_hw_tile(HW, C, itemsize, budget["tile_target"])
    n_t = pl.cdiv(HW, t_hw)
    # Partial-sum groups so both v7x TensorCores stream HW even when N == 1.
    G = 2 if (N == 1 and n_t >= 2) else 1
    tpg = pl.cdiv(n_t, G)
    needs_mask = (G * tpg * t_hw != HW)

    # ---- pass 1: tiled global-average-pool (spatial sum) -------------------
    pooled_sum = pl.pallas_call(
        functools.partial(_pool_kernel, hw=HW, t_hw=t_hw, tpg=tpg, needs_mask=needs_mask),
        out_shape=jax.ShapeDtypeStruct((N, G, C, 1), jnp.float32),
        grid_spec=pltpu.PrefetchScalarGridSpec(
            num_scalar_prefetch=0,
            grid=(N, G, tpg),
            in_specs=[pl.BlockSpec(
                (1, C, t_hw),
                lambda n, g, t: (n, 0, jnp.minimum(g * tpg + t, n_t - 1)))],
            out_specs=pl.BlockSpec((1, 1, C, 1), lambda n, g, t: (n, g, 0, 0)),
        ),
        compiler_params=pltpu.CompilerParams(
            dimension_semantics=("parallel", "parallel", "arbitrary"),
            vmem_limit_bytes=budget["vmem_limit"],
        ),
        cost_estimate=pl.CostEstimate(
            flops=N * C * HW,
            transcendentals=0,
            bytes_accessed=N * C * HW * itemsize + N * G * C * 4,
        ),
    )(x)

    # ---- tiny squeeze/excite FCs in plain XLA -------------------------------
    pooled = jnp.sum(pooled_sum[:, :, :, 0], axis=1) * (1.0 / float(HW))   # (N, C) f32
    h = jnp.maximum(pooled @ w1m.T + b1f, 0.0)                              # (N, Cs)
    scale = jax.nn.sigmoid(h @ w2m.T + b2f)                                 # (N, C)
    scale3 = scale[:, :, None].astype(dtype)                                # (N, C, 1)

    # ---- pass 2: channel-wise rescale, fully parallel ------------------------
    out = pl.pallas_call(
        _rescale_kernel,
        out_shape=jax.ShapeDtypeStruct((N, C, HW), dtype),
        grid_spec=pltpu.PrefetchScalarGridSpec(
            num_scalar_prefetch=0,
            grid=(N, n_t),
            in_specs=[
                pl.BlockSpec((1, C, t_hw), lambda n, t: (n, 0, t)),
                pl.BlockSpec((1, C, 1), lambda n, t: (n, 0, 0)),
            ],
            out_specs=pl.BlockSpec((1, C, t_hw), lambda n, t: (n, 0, t)),
        ),
        compiler_params=pltpu.CompilerParams(
            dimension_semantics=("parallel", "parallel"),
            vmem_limit_bytes=budget["vmem_limit"],
        ),
        cost_estimate=pl.CostEstimate(
            flops=N * C * HW,
            transcendentals=0,
            bytes_accessed=2 * N * C * HW * itemsize + N * C * itemsize,
        ),
        **alias_kwargs,
    )(x, scale3)
    return out.reshape(N, C, H, W)


def _reference(x, w1, b1, w2, b2):
    """Pure-JAX reference of the PyTorch forward (ReLU squeeze, Sigmoid excite)."""
    pooled = jnp.mean(x, axis=(2, 3))                                     # (N, C)
    h = jnp.maximum(pooled @ w1.reshape(w1.shape[0], -1).T + b1, 0.0)     # (N, Cs)
    s = jax.nn.sigmoid(h @ w2.reshape(w2.shape[0], -1).T + b2)            # (N, C)
    return x * s[:, :, None, None]


if __name__ == "__main__":
    key = jax.random.PRNGKey(0)
    k_x, k_w1, k_b1, k_w2, k_b2, k_x2 = jax.random.split(key, 6)

    N, C_IN, C_SQ, H, W = 2, 4, 2, 16, 16

    x = jax.random.normal(k_x, (N, C_IN, H, W), dtype=jnp.float32)
    # Conv2d(c_in, c_squeeze, k=1): weights (c_squeeze, c_in, 1, 1), plus bias
    w1 = jax.random.normal(k_w1, (C_SQ, C_IN, 1, 1), dtype=jnp.float32) * 0.5
    b1 = jax.random.normal(k_b1, (C_SQ,), dtype=jnp.float32) * 0.1
    # Conv2d(c_squeeze, c_in, k=1): weights (c_in, c_squeeze, 1, 1), plus bias
    w2 = jax.random.normal(k_w2, (C_IN, C_SQ, 1, 1), dtype=jnp.float32) * 0.5
    b2 = jax.random.normal(k_b2, (C_IN,), dtype=jnp.float32) * 0.1

    # --- fused single-pass path (slab fits VMEM) ---------------------------
    se_fused = jax.jit(squeeze_excitation)
    out = se_fused(x, w1, b1, w2, b2)
    jax.block_until_ready(out)
    ref = _reference(x, w1, b1, w2, b2)
    assert out.shape == (N, C_IN, H, W)
    assert jnp.allclose(out, ref, atol=1e-5, rtol=1e-5), "fused path mismatch vs reference"

    # --- two-pass path with a ragged HW tail (forced small tiles) ----------
    # Exercises the cdiv grid, in-kernel tail masking, clipped output blocks
    # and the G-way partial-sum split used on v7x when N == 1.
    x2 = jax.random.normal(k_x2, (1, C_IN, 20, 20), dtype=jnp.float32)
    se_two_pass = jax.jit(functools.partial(squeeze_excitation, fused=False, tile_hw=128))
    out2 = se_two_pass(x2, w1, b1, w2, b2)
    jax.block_until_ready(out2)
    ref2 = _reference(x2, w1, b1, w2, b2)
    assert out2.shape == x2.shape
    assert jnp.allclose(out2, ref2, atol=1e-5, rtol=1e-5), "two-pass path mismatch vs reference"

    print("KERNEL_OK")
</pallas_src>

<mosaic_0001>
module attributes {stable_mosaic.version = 11 : i64} {
  func.func @_fused_kernel(%arg0: i32, %arg1: memref<1x4x256xf32, #tpu.memory_space<vmem>>, %arg2: memref<4x2xf32, #tpu.memory_space<vmem>>, %arg3: memref<1x2xf32, #tpu.memory_space<vmem>>, %arg4: memref<4x2xf32, #tpu.memory_space<vmem>>, %arg5: memref<4x1xf32, #tpu.memory_space<vmem>>, %arg6: memref<1x4x256xf32, #tpu.memory_space<vmem>>) attributes {dimension_semantics = [#tpu.dimension_semantics<parallel>], iteration_bounds = array<i64: 2>, scalar_prefetch = 0 : i64, scratch_operands = 0 : i64, tpu.core_type = #tpu.core_type<tc>, window_params = [{transform_indices = @transform_0, window_bounds = array<i64: 1, 4, 256>}, {pipeline_mode = #tpu.pipeline_mode<synchronous>, transform_indices = @transform_1, window_bounds = array<i64: 4, 2>}, {pipeline_mode = #tpu.pipeline_mode<synchronous>, transform_indices = @transform_2, window_bounds = array<i64: 1, 2>}, {pipeline_mode = #tpu.pipeline_mode<synchronous>, transform_indices = @transform_3, window_bounds = array<i64: 4, 2>}, {pipeline_mode = #tpu.pipeline_mode<synchronous>, transform_indices = @transform_4, window_bounds = array<i64: 4, 1>}, {transform_indices = @transform_5, window_bounds = array<i64: 1, 4, 256>}]} {
    %c0 = arith.constant 0 : index
    %c0_0 = arith.constant 0 : index
    %c0_1 = arith.constant 0 : index
    %0 = vector.load %arg1[%c0, %c0_0, %c0_1] : memref<1x4x256xf32, #tpu.memory_space<vmem>>, vector<1x4x256xf32>
    %1 = vector.shape_cast %0 : vector<1x4x256xf32> to vector<4x256xf32>
    %cst = arith.constant dense<0.000000e+00> : vector<4xf32>
    %2 = vector.multi_reduction <add>, %1, %cst [1] : vector<4x256xf32> to vector<4xf32>
    %3 = vector.shape_cast %2 : vector<4xf32> to vector<4x1xf32>
    %cst_2 = arith.constant 3.906250e-03 : f32
    %4 = vector.broadcast %cst_2 : f32 to vector<4x1xf32>
    %5 = arith.mulf %3, %4 : vector<4x1xf32>
    %c0_3 = arith.constant 0 : index
    %c0_4 = arith.constant 0 : index
    %6 = vector.load %arg2[%c0_3, %c0_4] : memref<4x2xf32, #tpu.memory_space<vmem>>, vector<4x2xf32>
    %7 = vector.broadcast %5 : vector<4x1xf32> to vector<4x2xf32>
    %8 = arith.mulf %7, %6 : vector<4x2xf32>
    %cst_5 = arith.constant dense<0.000000e+00> : vector<2xf32>
    %9 = vector.multi_reduction <add>, %8, %cst_5 [0] : vector<4x2xf32> to vector<2xf32>
    %10 = vector.shape_cast %9 : vector<2xf32> to vector<1x2xf32>
    %c0_6 = arith.constant 0 : index
    %c0_7 = arith.constant 0 : index
    %11 = vector.load %arg3[%c0_6, %c0_7] : memref<1x2xf32, #tpu.memory_space<vmem>>, vector<1x2xf32>
    %12 = arith.addf %10, %11 : vector<1x2xf32>
    %cst_8 = arith.constant 0.000000e+00 : f32
    %13 = vector.broadcast %cst_8 : f32 to vector<1x2xf32>
    %14 = arith.maximumf %12, %13 : vector<1x2xf32>
    %c0_9 = arith.constant 0 : index
    %c0_10 = arith.constant 0 : index
    %15 = vector.load %arg4[%c0_9, %c0_10] : memref<4x2xf32, #tpu.memory_space<vmem>>, vector<4x2xf32>
    %16 = vector.broadcast %14 : vector<1x2xf32> to vector<4x2xf32>
    %17 = arith.mulf %16, %15 : vector<4x2xf32>
    %cst_11 = arith.constant dense<0.000000e+00> : vector<4xf32>
    %18 = vector.multi_reduction <add>, %17, %cst_11 [1] : vector<4x2xf32> to vector<4xf32>
    %19 = vector.shape_cast %18 : vector<4xf32> to vector<4x1xf32>
    %c0_12 = arith.constant 0 : index
    %c0_13 = arith.constant 0 : index
    %20 = vector.load %arg5[%c0_12, %c0_13] : memref<4x1xf32, #tpu.memory_space<vmem>>, vector<4x1xf32>
    %21 = arith.addf %19, %20 : vector<4x1xf32>
    %22 = arith.negf %21 : vector<4x1xf32>
    %23 = math.exp %22 : vector<4x1xf32>
    %cst_14 = arith.constant 1.000000e+00 : f32
    %24 = vector.broadcast %cst_14 : f32 to vector<4x1xf32>
    %25 = arith.addf %24, %23 : vector<4x1xf32>
    %26 = arith.divf %24, %25 : vector<4x1xf32>
    %27 = vector.broadcast %26 : vector<4x1xf32> to vector<4x256xf32>
    %28 = arith.mulf %1, %27 : vector<4x256xf32>
    %c0_15 = arith.constant 0 : index
    %c0_16 = arith.constant 0 : index
    %c0_17 = arith.constant 0 : index
    %29 = vector.load %arg6[%c0_15, %c0_16, %c0_17] : memref<1x4x256xf32, #tpu.memory_space<vmem>>, vector<1x4x256xf32>
    %30 = vector.shape_cast %29 : vector<1x4x256xf32> to vector<4x256xf32>
    %31 = vector.shape_cast %28 : vector<4x256xf32> to vector<1x4x256xf32>
    tpu.vector_store %arg6[%c0_15, %c0_16, %c0_17], %31 {strides = array<i32>} : memref<1x4x256xf32, #tpu.memory_space<vmem>>, vector<1x4x256xf32>,
    return
  }
  func.func @transform_0(%arg0: i32) -> (i32, i32, i32) {
    %c0_i32 = arith.constant 0 : i32
    %c0_i32_0 = arith.constant 0 : i32
    %c0_i32_1 = arith.constant 0 : i32
    return %arg0, %c0_i32, %c0_i32_0 : i32, i32, i32
  }
  func.func @transform_1(%arg0: i32) -> (i32, i32) {
    %c0_i32 = arith.constant 0 : i32
    %c0_i32_0 = arith.constant 0 : i32
    %c0_i32_1 = arith.constant 0 : i32
    return %c0_i32, %c0_i32_0 : i32, i32
  }
  func.func @transform_2(%arg0: i32) -> (i32, i32) {
    %c0_i32 = arith.constant 0 : i32
    %c0_i32_0 = arith.constant 0 : i32
    %c0_i32_1 = arith.constant 0 : i32
    return %c0_i32, %c0_i32_0 : i32, i32
  }
  func.func @transform_3(%arg0: i32) -> (i32, i32) {
    %c0_i32 = arith.constant 0 : i32
    %c0_i32_0 = arith.constant 0 : i32
    %c0_i32_1 = arith.constant 0 : i32
    return %c0_i32, %c0_i32_0 : i32, i32
  }
  func.func @transform_4(%arg0: i32) -> (i32, i32) {
    %c0_i32 = arith.constant 0 : i32
    %c0_i32_0 = arith.constant 0 : i32
    %c0_i32_1 = arith.constant 0 : i32
    return %c0_i32, %c0_i32_0 : i32, i32
  }
  func.func @transform_5(%arg0: i32) -> (i32, i32, i32) {
    %c0_i32 = arith.constant 0 : i32
    %c0_i32_0 = arith.constant 0 : i32
    %c0_i32_1 = arith.constant 0 : i32
    return %arg0, %c0_i32, %c0_i32_0 : i32, i32, i32
  }
}

</mosaic_0001>

<bundles_post_ra>
// kernel: squeeze_excitation.1
= control target key start
LH: loop header
LB: loop body
LE: loop exit
PB: predicated region body
PF: predicated region fallthrough
CT: control target
= control target key end

     0   :  { %s406_s18 = smov 0   ;;  %s444_s0 = inlined_call_operand.vmem [shape: f32[2,4,256], index: 0, kind: input, shape index: {}]   ;;  %s445_s1 = inlined_call_operand.vmem [shape: f32[4,2], index: 1, kind: input, shape index: {}]   ;;  %s446_s2 = inlined_call_operand.vmem [shape: f32[1,2], index: 2, kind: input, shape index: {}]   ;;  %s447_s3 = inlined_call_operand.vmem [shape: f32[4,2], index: 3, kind: input, shape index: {}]   ;;  %s448_s4 = inlined_call_operand.vmem [shape: f32[4,1], index: 4, kind: input, shape index: {}]   ;;  %s449_s5 = inlined_call_operand.vmem [shape: f32[2,4,256], index: 5, kind: output, shape index: {}]  }
   0x1 LB: > { %s335_s19 = sadd.s32 4294967295, %s372_s18   ;;  %p339_p0 = scmp.ge.s32.totalorder %s372_s18, 1  ;;  %s372_s18 = sphi %s406_s18, %s15_s18  }
   0x2   : > { %p187_p1 = scmp.lt.s32.totalorder %s372_s18, 3 }
   0x4   : > { %p188_p2 = pnand %p339_p0, %p187_p1 }
   0x5   : > { %p215_p3 = scmp.lt.s32.totalorder (!%p188_p2), %s335_s19, 1  ;;  %vm229_vm0 = vcmask (!%p188_p2), 1043456   ;;  %v236_v5 = vld [vmem:[%s445_s1] sm:$0xf] (!%p188_p2)  ;;  %vm238_vm1 = vcmask (!%p188_p2), 11264   ;;  %v250_v13 = vlaneseq (!%p188_p2)  ;;  %v374_v26 = vmov (!%p188_p2), 0  }
   0x6   : > { %191 = sbr.rel (%p188_p2) target bundleno = 493 (0x1ed), region = 40  ;;  %v246_v17 = vld [vmem:[%s446_s2] sm:$0x1] (!%p188_p2)  ;;  %359 = vset.pattern.permute.xlu1 (!%p188_p2), %v374_v26  ;;  %360 = vset.pattern.permute.xlu0 (!%p188_p2), %v374_v26  ;;  %v375_v34 = vmov (!%p188_p2), 839922192  }
   0x7   : > { %v251_v16 = vshrl.u32 (!%p188_p2), %v250_v13, 7  ;;  %v249_v22 = vld [vmem:[%s447_s3] sm:$0xf] (!%p188_p2)  ;;  %v271_v35 = vunpack.c.l.s4 (!%p188_p2), %v375_v34 }
   0x8   : > { %v258_v27 = vld [vmem:[%s448_s4] sm:$0xf] (!%p188_p2) }
   0x9   : > { %v252_v20 = vsub.s32 (!%p188_p2), 0, %v251_v16  ;;  %v272_v36 = vunpack.c.0.s8 (!%p188_p2), %v271_v35 }
   0xb   : > { %v275_v37 = vsub.s32 (!%p188_p2), %v272_v36, %v251_v16 }
   0xd   : > { %s451_s19 = smov (!%p215_p3, %s335_s19), 1 }
   0xe   : > { %s347_s20 = sshll.u32 %s451_s19, 3 }
   0xf   : > { %s219_s23 = scalar_lea.vmem %s444_s0, %s347_s20  ;;  %s224_s9 = scalar_lea.vmem %s449_s5, %s347_s20 }
  0x10   : > { %v225_v0 = vld [vmem:[%s219_s23] sm:$0xff] }
  0x11   : > { %v227_v1 = vcombine.high %v225_v0, %v225_v0  ;;  %v230_v2 = vsel %vm229_vm0, %v225_v0, 0.0 }
  0x13   : > { %v231_v3 = vsel %vm229_vm0, %v227_v1, 0.0 }
  0x14   : > { %v232_v4 = vadd.f32 %v231_v3, %v230_v2 }
  0x16   : > { %233 = vadd.xlane.f32.xlu0 %v232_v4 }
  0xa3   : > { %v234_v6 = vpop.xlane.xlu0 %233 }
  0xa4   : > { %v235_v7 = vmul.f32 0.00390625, %v234_v6 }
  0xa6   : > { %v237_v8 = vmul.f32 %v236_v5, %v235_v7 }
  0xa8   : > { %v239_v9 = vsel %vm238_vm1, %v237_v8, 0.0 }
  0xa9   : > { %v240_v10 = vrot.slane %v239_v9, 4 }
  0xab   : > { %v241_v11 = vadd.f32 %v240_v10, %v239_v9 }
  0xad   : > { %v242_v12 = vrot.slane %v241_v11, 2 }
  0xaf   : > { %v243_v14 = vadd.f32 %v242_v12, %v241_v11 }
  0xb1   : > { %v244_v15 = vrot.slane %v243_v14, 1 }
  0xb3   : > { %v245_v18 = vadd.f32 %v244_v15, %v243_v14 }
  0xb5   : > { %v247_v19 = vadd.f32 %v246_v17, %v245_v18 }
  0xb7   : > { %v248_v21 = vmax.f32 %v247_v19, 0.0 }
  0xb9   : > { %v253_v23 = vrot.slane %v248_v21, %v252_v20 }
  0xbb   : > { %v254_v24 = vmul.f32 %v253_v23, %v249_v22 }
  0xbd   : > { %v255_v25 = vsel %vm238_vm1, %v254_v24, 0.0 }
  0xbe   : > { %256 = vadd.xlane.f32.xlu0 %v255_v25 }
 0x14b   : > { %v257_v28 = vpop.xlane.xlu0 %256 }
 0x14c   : > { %v259_v29 = vadd.f32 %v258_v27, %v257_v28 }
 0x14e   : > { %v344_v30 = vmul.f32 -1.442695, %v259_v29 }
 0x150   : > { %362 = vpow2.f32 %v344_v30 }
 0x15a   : > { %v363_v31 = vpop.eup %362 }
 0x15b   : > { %v263_v32 = vadd.f32 1.0, %v363_v31 }
 0x15d   : > { %364 = vrcp.f32 %v263_v32 }
 0x167   : > { %v365_v33 = vpop.eup %364 }
 0x168   : > { %268 = vperm.xlu1 %359, %v365_v33  }
 0x1e7   : > { %v269_v38 = vpop.permute.xlu1 %268 }
 0x1e8   : > { %v276_v39 = vrot.slane %v269_v38, %v275_v37 }
 0x1ea   : > { %v278_v40 = vmul.f32 %v276_v39, %v225_v0 }
 0x1ec   : > { %279 = vst [vmem:[%s224_s9] sm:$0xff] %v278_v40 }
 0x1ed PF: > { %s15_s18 = sadd.s32 1, %s372_s18  }
 0x1ee   : > { %p12_p4 = scmp.ge.s32.totalorder %s15_s18, 4  }
 0x1f0   :  { %14 = sbr.rel (!%p12_p4) target bundleno = 1 (0x1), region = 70 }

</bundles_post_ra>
